<compile_context>
chip_gen: v5e
topology: v5e:2x2
jax: 0.10.0
libtpu: 0.0.40
codegen_flags: <defaults>
</compile_context>

<pallas_src>
import functools

import jax
import jax.numpy as jnp
from jax import lax
from jax.experimental import pallas as pl
from jax.experimental.pallas import tpu as pltpu

BN_EPS = 1e-5
LRELU_SLOPE = 0.2
LANE = 128
VMEM_LIMIT = 48 * 1024 * 1024   # conservative scoped-VMEM budget (fits v5e/v6e/v7x)


def _round_up(x, m):
    return (x + m - 1) // m * m


# ---------------------------------------------------------------------------
# Pass 1: matmul + bias + per-channel batch-stat accumulation
# ---------------------------------------------------------------------------
def conv_stats_kernel(p_ref, w_ref, b_ref, y_ref, mean_ref, rstd_ref, *, m_true, tm):
    # p_ref: [TM, Kp] bf16, w_ref: [Kp, TC] bf16, b_ref: [1, TC] f32
    # y_ref: [TM, TC] f32, mean_ref / rstd_ref: [1, TC] f32 (resident accumulators)
    j = pl.program_id(1)

    @pl.when(j == 0)
    def _init():
        mean_ref[...] = jnp.zeros_like(mean_ref)
        rstd_ref[...] = jnp.zeros_like(rstd_ref)

    y = jnp.dot(p_ref[...], w_ref[...], preferred_element_type=jnp.float32)
    y = y + b_ref[...]
    y_ref[...] = y

    # Mask rows that are pure M-padding so they don't pollute the batch statistics.
    row = j * tm + lax.broadcasted_iota(jnp.int32, y.shape, 0)
    valid = (row < m_true).astype(jnp.float32)
    ym = y * valid
    mean_ref[...] += jnp.sum(ym, axis=0, keepdims=True)       # running sum(y)
    rstd_ref[...] += jnp.sum(ym * y, axis=0, keepdims=True)   # running sum(y^2)

    @pl.when(j == pl.num_programs(1) - 1)
    def _finalize():
        mean = mean_ref[...] / m_true
        var = jnp.maximum(rstd_ref[...] / m_true - mean * mean, 0.0)
        mean_ref[...] = mean
        rstd_ref[...] = lax.rsqrt(var + BN_EPS)


# ---------------------------------------------------------------------------
# Pass 2: BN normalize (gamma/beta) + LeakyReLU, in place on y
# ---------------------------------------------------------------------------
def normalize_kernel(y_ref, mean_ref, rstd_ref, g_ref, beta_ref, o_ref):
    yn = (y_ref[...] - mean_ref[...]) * (rstd_ref[...] * g_ref[...]) + beta_ref[...]
    o_ref[...] = jnp.where(yn > 0, yn, LRELU_SLOPE * yn)


# ---------------------------------------------------------------------------
# XLA glue: reflect pad + im2col
# ---------------------------------------------------------------------------
def im2col_reflect(x, kh=4, kw=4, stride=2, pad=1):
    """x: [N, Cin, H, W] -> patches [N*Ho*Wo, Cin*kh*kw], plus (Ho, Wo)."""
    n, cin, h, w = x.shape
    xp = jnp.pad(x, ((0, 0), (0, 0), (pad, pad), (pad, pad)), mode="reflect")
    ho = (h + 2 * pad - kh) // stride + 1
    wo = (w + 2 * pad - kw) // stride + 1
    cols = []
    for i in range(kh):
        for j in range(kw):
            cols.append(xp[:, :, i:i + stride * ho:stride, j:j + stride * wo:stride])
    p = jnp.stack(cols, axis=2)                               # [N, Cin, kh*kw, Ho, Wo]
    p = jnp.transpose(p, (0, 3, 4, 1, 2)).reshape(n * ho * wo, cin * kh * kw)
    return p, ho, wo


def gen_block(x, conv_w, conv_b, bn_gamma, bn_beta, *, tm_max=512):
    """x: [N, Cin, H, W] (NCHW), conv_w: [Cout, Cin, 4, 4]. Returns NCHW output (f32)."""
    n, cin, h, w = x.shape
    cout = conv_w.shape[0]

    patches, ho, wo = im2col_reflect(x)                       # [M, K]
    m, k = patches.shape

    # Lane-dense padding + tile sizing.
    cout_p = _round_up(cout, LANE)
    k_p = _round_up(k, LANE)
    tc = LANE
    tm = min(tm_max, _round_up(m, 16))                        # bf16 sublane packing
    m_p = _round_up(m, tm)
    nc, nm = cout_p // tc, m_p // tm
    grid = (nc, nm)

    # bf16 MXU operands (f32 accumulation inside the kernel); zero padding is inert.
    patches_p = jnp.zeros((m_p, k_p), jnp.bfloat16).at[:m, :k].set(
        patches.astype(jnp.bfloat16))
    w_p = jnp.zeros((k_p, cout_p), jnp.bfloat16).at[:k, :cout].set(
        conv_w.reshape(cout, k).T.astype(jnp.bfloat16))
    b_p = jnp.zeros((1, cout_p), jnp.float32).at[:, :cout].set(
        conv_b.reshape(1, cout).astype(jnp.float32))
    g_p = jnp.zeros((1, cout_p), jnp.float32).at[:, :cout].set(
        bn_gamma.reshape(1, cout).astype(jnp.float32))
    beta_p = jnp.zeros((1, cout_p), jnp.float32).at[:, :cout].set(
        bn_beta.reshape(1, cout).astype(jnp.float32))

    # ---- Pass 1: conv (matmul+bias) + batch-stat accumulation ----
    vec_spec = pl.BlockSpec((1, tc), lambda i, j: (0, i))
    y_pad, mean, rstd = pl.pallas_call(
        functools.partial(conv_stats_kernel, m_true=m, tm=tm),
        out_shape=(
            jax.ShapeDtypeStruct((m_p, cout_p), jnp.float32),   # y (pre-BN)
            jax.ShapeDtypeStruct((1, cout_p), jnp.float32),     # mean
            jax.ShapeDtypeStruct((1, cout_p), jnp.float32),     # rstd
        ),
        grid=grid,
        in_specs=[
            pl.BlockSpec((tm, k_p), lambda i, j: (j, 0)),       # patches tile
            pl.BlockSpec((k_p, tc), lambda i, j: (0, i)),       # weight tile
            vec_spec,                                           # bias
        ],
        out_specs=(
            pl.BlockSpec((tm, tc), lambda i, j: (j, i)),        # y tile
            vec_spec,                                           # mean (resident over j)
            vec_spec,                                           # rstd (resident over j)
        ),
        compiler_params=pltpu.CompilerParams(
            dimension_semantics=("parallel", "arbitrary"),
            vmem_limit_bytes=VMEM_LIMIT),
        cost_estimate=pl.CostEstimate(
            flops=2 * m_p * k_p * cout_p,
            transcendentals=0,
            bytes_accessed=m_p * k_p * 2 + k_p * cout_p * 2 + m_p * cout_p * 4),
    )(patches_p, w_p, b_p)

    # ---- Pass 2: normalize + gamma/beta + LeakyReLU (in place on y) ----
    out_flat = pl.pallas_call(
        normalize_kernel,
        out_shape=jax.ShapeDtypeStruct((m_p, cout_p), jnp.float32),
        grid=grid,
        in_specs=[
            pl.BlockSpec((tm, tc), lambda i, j: (j, i)),        # y tile
            vec_spec, vec_spec, vec_spec, vec_spec,             # mean, rstd, gamma, beta
        ],
        out_specs=pl.BlockSpec((tm, tc), lambda i, j: (j, i)),
        compiler_params=pltpu.CompilerParams(
            dimension_semantics=("parallel", "parallel"),
            vmem_limit_bytes=VMEM_LIMIT),
        input_output_aliases={0: 0},
    )(y_pad, mean, rstd, g_p, beta_p)

    out = out_flat[:m, :cout]                                   # drop padding
    # [M, Cout] -> [N, Ho, Wo, Cout] -> NCHW (matches the PyTorch module's layout).
    return jnp.transpose(out.reshape(n, ho, wo, cout), (0, 3, 1, 2))


# ---------------------------------------------------------------------------
# Pure-JAX f32 reference (same semantics as the PyTorch module, training-mode BN)
# ---------------------------------------------------------------------------
def gen_block_reference(x, conv_w, conv_b, bn_gamma, bn_beta):
    xp = jnp.pad(x, ((0, 0), (0, 0), (1, 1), (1, 1)), mode="reflect")
    y = lax.conv_general_dilated(
        xp.astype(jnp.float32), conv_w.astype(jnp.float32),
        window_strides=(2, 2), padding="VALID",
        dimension_numbers=("NCHW", "OIHW", "NCHW"))
    y = y + conv_b.reshape(1, -1, 1, 1)
    mean = jnp.mean(y, axis=(0, 2, 3), keepdims=True)
    var = jnp.mean((y - mean) ** 2, axis=(0, 2, 3), keepdims=True)
    yn = (y - mean) * lax.rsqrt(var + BN_EPS)
    yn = yn * bn_gamma.reshape(1, -1, 1, 1) + bn_beta.reshape(1, -1, 1, 1)
    return jnp.where(yn > 0, yn, LRELU_SLOPE * yn)


if __name__ == "__main__":
    N, CIN, COUT, H, W = 2, 4, 8, 16, 16

    key = jax.random.PRNGKey(0)
    kx, kw, kb = jax.random.split(key, 3)
    x = jax.random.normal(kx, (N, CIN, H, W), dtype=jnp.float32)

    # PyTorch-style shapes/init: conv_w [Cout, Cin, 4, 4]
    fan_in = CIN * 4 * 4
    bound = 1.0 / (fan_in ** 0.5)
    conv_w = jax.random.uniform(kw, (COUT, CIN, 4, 4), jnp.float32, -bound, bound)
    conv_b = jax.random.uniform(kb, (COUT,), jnp.float32, -bound, bound)
    bn_gamma = jnp.ones((COUT,), jnp.float32)    # default BatchNorm2d affine init
    bn_beta = jnp.zeros((COUT,), jnp.float32)

    out = gen_block(x, conv_w, conv_b, bn_gamma, bn_beta)
    out = jax.block_until_ready(out)

    ref = gen_block_reference(x, conv_w, conv_b, bn_gamma, bn_beta)
    assert out.shape == (N, COUT, H // 2, W // 2), out.shape
    # bf16 MXU operands (f32 accumulation) vs. pure-f32 reference -> relaxed tolerance.
    assert jnp.allclose(out, ref, atol=3e-2, rtol=3e-2), float(jnp.max(jnp.abs(out - ref)))

    print("KERNEL_OK")
</pallas_src>

<mosaic_0001>
module attributes {stable_mosaic.version = 11 : i64} {
  func.func @conv_stats_kernel(%arg0: i32, %arg1: i32, %arg2: memref<128x128xbf16, #tpu.memory_space<vmem>>, %arg3: memref<128x128xbf16, #tpu.memory_space<vmem>>, %arg4: memref<1x128xf32, #tpu.memory_space<vmem>>, %arg5: memref<128x128xf32, #tpu.memory_space<vmem>>, %arg6: memref<1x128xf32, #tpu.memory_space<vmem>>, %arg7: memref<1x128xf32, #tpu.memory_space<vmem>>) attributes {dimension_semantics = [#tpu.dimension_semantics<parallel>, #tpu.dimension_semantics<arbitrary>], iteration_bounds = array<i64: 1, 1>, scalar_prefetch = 0 : i64, scratch_operands = 0 : i64, tpu.core_type = #tpu.core_type<tc>, window_params = [{transform_indices = @transform_0, window_bounds = array<i64: 128, 128>}, {transform_indices = @transform_1, window_bounds = array<i64: 128, 128>}, {transform_indices = @transform_2, window_bounds = array<i64: 1, 128>}, {transform_indices = @transform_3, window_bounds = array<i64: 128, 128>}, {transform_indices = @transform_4, window_bounds = array<i64: 1, 128>}, {transform_indices = @transform_5, window_bounds = array<i64: 1, 128>}]} {
    %c0_i32 = arith.constant 0 : i32
    %0 = arith.cmpi eq, %arg1, %c0_i32 : i32
    %1 = arith.extui %0 : i1 to i32
    %c0_i32_0 = arith.constant 0 : i32
    %2 = arith.cmpi ne, %1, %c0_i32_0 : i32
    scf.if %2 {
      %cst_21 = arith.constant 0.000000e+00 : f32
      %33 = vector.broadcast %cst_21 : f32 to vector<1x128xf32>
      %c0_22 = arith.constant 0 : index
      %c0_23 = arith.constant 0 : index
      %34 = vector.load %arg6[%c0_22, %c0_23] : memref<1x128xf32, #tpu.memory_space<vmem>>, vector<1x128xf32>
      tpu.vector_store %arg6[%c0_22, %c0_23], %33 {strides = array<i32>} : memref<1x128xf32, #tpu.memory_space<vmem>>, vector<1x128xf32>,
      %cst_24 = arith.constant 0.000000e+00 : f32
      %35 = vector.broadcast %cst_24 : f32 to vector<1x128xf32>
      %c0_25 = arith.constant 0 : index
      %c0_26 = arith.constant 0 : index
      %36 = vector.load %arg7[%c0_25, %c0_26] : memref<1x128xf32, #tpu.memory_space<vmem>>, vector<1x128xf32>
      tpu.vector_store %arg7[%c0_25, %c0_26], %35 {strides = array<i32>} : memref<1x128xf32, #tpu.memory_space<vmem>>, vector<1x128xf32>,
    } else {
    }
    %c0 = arith.constant 0 : index
    %c0_1 = arith.constant 0 : index
    %3 = vector.load %arg2[%c0, %c0_1] : memref<128x128xbf16, #tpu.memory_space<vmem>>, vector<128x128xbf16>
    %c0_2 = arith.constant 0 : index
    %c0_3 = arith.constant 0 : index
    %4 = vector.load %arg3[%c0_2, %c0_3] : memref<128x128xbf16, #tpu.memory_space<vmem>>, vector<128x128xbf16>
    %cst = arith.constant dense<0.000000e+00> : vector<128x128xf32>
    %5 = tpu.matmul %3, %4, %cst {dimension_numbers = #tpu.dot_dimension_numbers<[1], [0], [0], [1], [0, 0, 1, 1], [], []>} : vector<128x128xbf16>, vector<128x128xbf16>, vector<128x128xf32> -> vector<128x128xf32>
    %c0_4 = arith.constant 0 : index
    %c0_5 = arith.constant 0 : index
    %6 = vector.load %arg4[%c0_4, %c0_5] : memref<1x128xf32, #tpu.memory_space<vmem>>, vector<1x128xf32>
    %7 = vector.broadcast %6 : vector<1x128xf32> to vector<128x128xf32>
    %8 = arith.addf %5, %7 : vector<128x128xf32>
    %c0_6 = arith.constant 0 : index
    %c0_7 = arith.constant 0 : index
    %9 = vector.load %arg5[%c0_6, %c0_7] : memref<128x128xf32, #tpu.memory_space<vmem>>, vector<128x128xf32>
    tpu.vector_store %arg5[%c0_6, %c0_7], %8 {strides = array<i32>} : memref<128x128xf32, #tpu.memory_space<vmem>>, vector<128x128xf32>,
    %c128_i32 = arith.constant 128 : i32
    %10 = arith.muli %arg1, %c128_i32 : i32
    %11 = tpu.iota {dimensions = array<i32: 0>} : vector<128x128xi32>
    %12 = vector.broadcast %10 : i32 to vector<128x128xi32>
    %13 = arith.addi %12, %11 : vector<128x128xi32>
    %c128_i32_8 = arith.constant 128 : i32
    %14 = vector.broadcast %c128_i32_8 : i32 to vector<128x128xi32>
    %15 = arith.cmpi slt, %13, %14 : vector<128x128xi32>
    %16 = arith.extui %15 : vector<128x128xi1> to vector<128x128xi32>
    %17 = arith.sitofp %16 : vector<128x128xi32> to vector<128x128xf32>
    %18 = arith.mulf %8, %17 : vector<128x128xf32>
    %c0_9 = arith.constant 0 : index
    %c0_10 = arith.constant 0 : index
    %19 = vector.load %arg6[%c0_9, %c0_10] : memref<1x128xf32, #tpu.memory_space<vmem>>, vector<1x128xf32>
    %cst_11 = arith.constant dense<0.000000e+00> : vector<128xf32>
    %20 = vector.multi_reduction <add>, %18, %cst_11 [0] : vector<128x128xf32> to vector<128xf32>
    %21 = vector.shape_cast %20 : vector<128xf32> to vector<1x128xf32>
    %22 = arith.addf %19, %21 : vector<1x128xf32>
    %c0_12 = arith.constant 0 : index
    %c0_13 = arith.constant 0 : index
    %23 = vector.load %arg6[%c0_12, %c0_13] : memref<1x128xf32, #tpu.memory_space<vmem>>, vector<1x128xf32>
    tpu.vector_store %arg6[%c0_12, %c0_13], %22 {strides = array<i32>} : memref<1x128xf32, #tpu.memory_space<vmem>>, vector<1x128xf32>,
    %c0_14 = arith.constant 0 : index
    %c0_15 = arith.constant 0 : index
    %24 = vector.load %arg7[%c0_14, %c0_15] : memref<1x128xf32, #tpu.memory_space<vmem>>, vector<1x128xf32>
    %25 = arith.mulf %18, %8 : vector<128x128xf32>
    %cst_16 = arith.constant dense<0.000000e+00> : vector<128xf32>
    %26 = vector.multi_reduction <add>, %25, %cst_16 [0] : vector<128x128xf32> to vector<128xf32>
    %27 = vector.shape_cast %26 : vector<128xf32> to vector<1x128xf32>
    %28 = arith.addf %24, %27 : vector<1x128xf32>
    %c0_17 = arith.constant 0 : index
    %c0_18 = arith.constant 0 : index
    %29 = vector.load %arg7[%c0_17, %c0_18] : memref<1x128xf32, #tpu.memory_space<vmem>>, vector<1x128xf32>
    tpu.vector_store %arg7[%c0_17, %c0_18], %28 {strides = array<i32>} : memref<1x128xf32, #tpu.memory_space<vmem>>, vector<1x128xf32>,
    %c0_i32_19 = arith.constant 0 : i32
    %30 = arith.cmpi eq, %arg1, %c0_i32_19 : i32
    %31 = arith.extui %30 : i1 to i32
    %c0_i32_20 = arith.constant 0 : i32
    %32 = arith.cmpi ne, %31, %c0_i32_20 : i32
    scf.if %32 {
      %c0_21 = arith.constant 0 : index
      %c0_22 = arith.constant 0 : index
      %33 = vector.load %arg6[%c0_21, %c0_22] : memref<1x128xf32, #tpu.memory_space<vmem>>, vector<1x128xf32>
      %cst_23 = arith.constant 1.280000e+02 : f32
      %34 = vector.broadcast %cst_23 : f32 to vector<1x128xf32>
      %35 = arith.divf %33, %34 : vector<1x128xf32>
      %c0_24 = arith.constant 0 : index
      %c0_25 = arith.constant 0 : index
      %36 = vector.load %arg7[%c0_24, %c0_25] : memref<1x128xf32, #tpu.memory_space<vmem>>, vector<1x128xf32>
      %cst_26 = arith.constant 1.280000e+02 : f32
      %37 = vector.broadcast %cst_26 : f32 to vector<1x128xf32>
      %38 = arith.divf %36, %37 : vector<1x128xf32>
      %39 = arith.mulf %35, %35 : vector<1x128xf32>
      %40 = arith.subf %38, %39 : vector<1x128xf32>
      %cst_27 = arith.constant 0.000000e+00 : f32
      %41 = vector.broadcast %cst_27 : f32 to vector<1x128xf32>
      %42 = arith.maximumf %40, %41 : vector<1x128xf32>
      %c0_28 = arith.constant 0 : index
      %c0_29 = arith.constant 0 : index
      %43 = vector.load %arg6[%c0_28, %c0_29] : memref<1x128xf32, #tpu.memory_space<vmem>>, vector<1x128xf32>
      tpu.vector_store %arg6[%c0_28, %c0_29], %35 {strides = array<i32>} : memref<1x128xf32, #tpu.memory_space<vmem>>, vector<1x128xf32>,
      %cst_30 = arith.constant 9.99999974E-6 : f32
      %44 = vector.broadcast %cst_30 : f32 to vector<1x128xf32>
      %45 = arith.addf %42, %44 : vector<1x128xf32>
      %46 = math.rsqrt %45 : vector<1x128xf32>
      %c0_31 = arith.constant 0 : index
      %c0_32 = arith.constant 0 : index
      %47 = vector.load %arg7[%c0_31, %c0_32] : memref<1x128xf32, #tpu.memory_space<vmem>>, vector<1x128xf32>
      tpu.vector_store %arg7[%c0_31, %c0_32], %46 {strides = array<i32>} : memref<1x128xf32, #tpu.memory_space<vmem>>, vector<1x128xf32>,
    } else {
    }
    return
  }
  func.func @transform_0(%arg0: i32, %arg1: i32) -> (i32, i32) {
    %c0_i32 = arith.constant 0 : i32
    %c0_i32_0 = arith.constant 0 : i32
    return %arg1, %c0_i32 : i32, i32
  }
  func.func @transform_1(%arg0: i32, %arg1: i32) -> (i32, i32) {
    %c0_i32 = arith.constant 0 : i32
    %c0_i32_0 = arith.constant 0 : i32
    return %c0_i32, %arg0 : i32, i32
  }
  func.func @transform_2(%arg0: i32, %arg1: i32) -> (i32, i32) {
    %c0_i32 = arith.constant 0 : i32
    %c0_i32_0 = arith.constant 0 : i32
    return %c0_i32, %arg0 : i32, i32
  }
  func.func @transform_3(%arg0: i32, %arg1: i32) -> (i32, i32) {
    %c0_i32 = arith.constant 0 : i32
    return %arg1, %arg0 : i32, i32
  }
  func.func @transform_4(%arg0: i32, %arg1: i32) -> (i32, i32) {
    %c0_i32 = arith.constant 0 : i32
    %c0_i32_0 = arith.constant 0 : i32
    return %c0_i32, %arg0 : i32, i32
  }
  func.func @transform_5(%arg0: i32, %arg1: i32) -> (i32, i32) {
    %c0_i32 = arith.constant 0 : i32
    %c0_i32_0 = arith.constant 0 : i32
    return %c0_i32, %arg0 : i32, i32
  }
}

</mosaic_0001>

<bundles_post_ra>
// kernel: tpu_custom_call.1
= control target key start
LH: loop header
LB: loop body
LE: loop exit
PB: predicated region body
PF: predicated region fallthrough
CT: control target
= control target key end

     0   :  { %11 = vsyncpa [#allocation3], 0  ;;  %s847_s0 = inlined_call_operand.hbm [shape: bf16[128,128], index: 0, kind: input, shape index: {}]   ;;  %s848_s1 = inlined_call_operand.hbm [shape: bf16[128,128], index: 1, kind: input, shape index: {}]   ;;  %s849_s2 = inlined_call_operand.vmem [shape: f32[1,128], index: 2, kind: input, shape index: {}]   ;;  %s850_s3 = inlined_call_operand.hbm [shape: f32[128,128], index: 3, kind: output, shape index: {0}]   ;;  %s851_s4 = inlined_call_operand.hbm [shape: f32[1,128], index: 4, kind: output, shape index: {1}]   ;;  %s852_s5 = inlined_call_operand.hbm [shape: f32[1,128], index: 5, kind: output, shape index: {2}]  }
   0x1   :  { %12 = vsyncpa [#allocation6], 0 }
   0x2   :  { %13 = vsyncpa [#allocation4], 0 }
   0x3   :  { %14 = vsyncpa [#allocation9], 0  ;;  %s19_s20 = sshll.u32 %s847_s0, 4  ;;  %s746_s21 = smov [#allocation2]   ;;  %s20_s20 = int_to_ptr.hbm [resolvable:$true] %s19_s20 }
   0x4   :  { %s21_s22 = sshll.u32 %s746_s21, 4  ;;  %s32_s25 = sshll.u32 %s848_s1, 4  ;;  %s22_s22 = int_to_ptr.vmem [resolvable:$true] %s21_s22  ;;  %s33_s25 = int_to_ptr.hbm [resolvable:$true] %s32_s25 }
   0x5   :  { %s747_s26 = smov 64   ;;  %s748_s27 = smov 4  }
   0x6   :  { %27 = dma.hbm_to_vmem [thread:$0]  %s20_s20, 1024, %s22_s22, [#allocation3], %s747_s26, %s747_s26, %s748_s27  }
   0x7   :  { %s749_s28 = smov [#allocation5]  }
   0x8   :  { %s34_s29 = sshll.u32 %s749_s28, 4  ;;  %s35_s29 = int_to_ptr.vmem [resolvable:$true] %s34_s29 }
   0x9   :  { %40 = dma.hbm_to_vmem [thread:$0]  %s33_s25, 1024, %s35_s29, [#allocation6], %s747_s26, %s747_s26, %s748_s27  }
   0xa   :  { %738 = dma.done.wait [#allocation3], 1024  }
   0xb   :  { %739 = vsyncadd [#allocation3], 4294966272 }
   0xc   :  { %740 = dma.done.wait [#allocation6], 1024  }
   0xd   :  { %741 = vsyncadd [#allocation6], 4294966272  ;;  %v577_v0 = vld [vmem:[#allocation5 + $0x38] sm:$0xff]  ;;  %v576_v1 = vld [vmem:[#allocation5 + $0x30] sm:$0xff]  ;;  %s453_s8 = sshll.u32 %s850_s3, 4  ;;  %v751_v57 = vmov 0.0   ;;  %s454_s8 = int_to_ptr.hbm [resolvable:$true] %s453_s8 }
   0xe   :  { %189 = vmatpush.bf16.msra.mxu0 %v577_v0  ;;  %578 = vmatpush.bf16.msra.mxu1 %v577_v0  ;;  %v575_v2 = vld [vmem:[#allocation5 + $0x28] sm:$0xff]  ;;  %v574_v3 = vld [vmem:[#allocation5 + $0x20] sm:$0xff]  ;;  %v573_v4 = vld [vmem:[#allocation5 + $0x18] sm:$0xff]  ;;  %55 = vst [vmem:[#allocation8] sm:$0x1] %v751_v57  ;;  %s752_s3 = smov 128  }
   0xf   :  { %579 = vmatpush.bf16.msra.mxu2 %v577_v0  ;;  %580 = vmatpush.bf16.msra.mxu3 %v577_v0  ;;  %v572_v5 = vld [vmem:[#allocation5 + $0x10] sm:$0xff]  ;;  %v571_v6 = vld [vmem:[#allocation5 + $0x8] sm:$0xff]  ;;  %v570_v7 = vld [vmem:[#allocation5] sm:$0xff]  ;;  %56 = vst [vmem:[#allocation10] sm:$0x1] %v751_v57  ;;  %s753_s9 = smov 8  }
  0x10   :  { %v562_v8 = vld [vmem:[#allocation2] sm:$0xff]  ;;  %v564_v9 = vld [vmem:[#allocation2 + $0x10] sm:$0xff]  ;;  %v563_v12 = vld [vmem:[#allocation2 + $0x8] sm:$0xff]  ;;  %s755_s10 = smov [#allocation8]   ;;  %s467_s14 = sshll.u32 %s851_s4, 4  ;;  %s468_s14 = int_to_ptr.hbm [resolvable:$true] %s467_s14 }
  0x11   :  { %v566_v10 = vld [vmem:[#allocation2 + $0x20] sm:$0xff]  ;;  %v568_v11 = vld [vmem:[#allocation2 + $0x30] sm:$0xff]  ;;  %v565_v13 = vld [vmem:[#allocation2 + $0x18] sm:$0xff]  ;;  %s465_s11 = sshll.u32 %s755_s10, 4  ;;  %s756_s4 = smov [#allocation10]   ;;  %s466_s11 = int_to_ptr.vmem [resolvable:$true] %s465_s11 }
  0x12   :  { %190 = vmatpush.bf16.msra.mxu0 %v576_v1  ;;  %581 = vmatpush.bf16.msra.mxu1 %v576_v1  ;;  %v567_v14 = vld [vmem:[#allocation2 + $0x28] sm:$0xff]  ;;  %v569_v15 = vld [vmem:[#allocation2 + $0x38] sm:$0xff]  ;;  %v796_v16 = vld [vmem:[%s849_s2] ss:$0 sm:$0xff]  ;;  %s750_s2 = smov [#allocation7]   ;;  %s476_s15 = sshll.u32 %s756_s4, 4  ;;  %s477_s15 = int_to_ptr.vmem [resolvable:$true] %s476_s15 }
  0x13   :  { %582 = vmatpush.bf16.msra.mxu2 %v576_v1  ;;  %583 = vmatpush.bf16.msra.mxu3 %v576_v1  ;;  %s451_s30 = sshll.u32 %s750_s2, 4  ;;  %s478_s18 = sshll.u32 %s852_s5, 4  ;;  %s452_s30 = int_to_ptr.vmem [resolvable:$true] %s451_s30  ;;  %s479_s18 = int_to_ptr.hbm [resolvable:$true] %s478_s18 }
  0x16   :  { %191 = vmatpush.bf16.msra.mxu0 %v575_v2  ;;  %584 = vmatpush.bf16.msra.mxu1 %v575_v2 }
  0x17   :  { %585 = vmatpush.bf16.msra.mxu2 %v575_v2  ;;  %586 = vmatpush.bf16.msra.mxu3 %v575_v2 }
  0x1a   :  { %192 = vmatpush.bf16.msra.mxu0 %v574_v3  ;;  %587 = vmatpush.bf16.msra.mxu1 %v574_v3 }
  0x1b   :  { %588 = vmatpush.bf16.msra.mxu2 %v574_v3  ;;  %589 = vmatpush.bf16.msra.mxu3 %v574_v3 }
  0x1e   :  { %193 = vmatpush.bf16.msra.mxu0 %v573_v4  ;;  %590 = vmatpush.bf16.msra.mxu1 %v573_v4 }
  0x1f   :  { %591 = vmatpush.bf16.msra.mxu2 %v573_v4  ;;  %592 = vmatpush.bf16.msra.mxu3 %v573_v4 }
  0x22   :  { %194 = vmatpush.bf16.msra.mxu0 %v572_v5  ;;  %593 = vmatpush.bf16.msra.mxu1 %v572_v5 }
  0x23   :  { %594 = vmatpush.bf16.msra.mxu2 %v572_v5  ;;  %595 = vmatpush.bf16.msra.mxu3 %v572_v5 }
  0x26   :  { %195 = vmatpush.bf16.msra.mxu0 %v571_v6  ;;  %596 = vmatpush.bf16.msra.mxu1 %v571_v6 }
  0x27   :  { %597 = vmatpush.bf16.msra.mxu2 %v571_v6  ;;  %598 = vmatpush.bf16.msra.mxu3 %v571_v6 }
  0x2a   :  { %196 = vmatpush.bf16.msra.mxu0 %v570_v7  ;;  %599 = vmatpush.bf16.msra.mxu1 %v570_v7 }
  0x2b   :  { %600 = vmatpush.bf16.msra.mxu2 %v570_v7  ;;  %601 = vmatpush.bf16.msra.mxu3 %v570_v7 }
  0x2d   :  { %197 = vmatmul.bf16.vlgmr.msra.gmra.mxu0 %v562_v8  ;;  %207 = vmatmul.bf16.vlgmr.msra.gmra.mxu1 %v564_v9 }
  0x2e   :  { %217 = vmatmul.bf16.vlgmr.msra.gmra.mxu2 %v566_v10  ;;  %227 = vmatmul.bf16.vlgmr.msra.gmra.mxu3 %v568_v11 }
  0x3d   :  { %202 = vmatmul.bf16.gmra.mxu0 %v563_v12  ;;  %212 = vmatmul.bf16.gmra.mxu1 %v565_v13 }
  0x3e   :  { %222 = vmatmul.bf16.gmra.mxu2 %v567_v14  ;;  %232 = vmatmul.bf16.gmra.mxu3 %v569_v15 }
  0xaa   :  { %v198_v17 = vpop.f32.mrf.mxu0  ;;  %v208_v18 = vpop.f32.mrf.mxu1 }
  0xab   :  { %v199_v19 = vadd.f32 %v796_v16, %v198_v17  ;;  %v209_v20 = vadd.f32 %v796_v16, %v208_v18 }
  0xad   :  { %238 = vst [vmem:[#allocation7] sm:$0xff] %v199_v19  ;;  %v378_v38 = vmul.f32 %v199_v19, %v199_v19  ;;  %v382_v54 = vmul.f32 %v209_v20, %v209_v20 }
  0xae   :  { %242 = vst [vmem:[#allocation7 + $0x20] sm:$0xff] %v209_v20 }
  0xb1   :  { %v218_v21 = vpop.f32.mrf.mxu2  ;;  %v228_v22 = vpop.f32.mrf.mxu3 }
  0xb2   :  { %v200_v23 = vpop.f32.mrf.mxu0  ;;  %v210_v24 = vpop.f32.mrf.mxu1  ;;  %v801_v25 = vadd.f32 %v796_v16, %v218_v21  ;;  %v806_v28 = vadd.f32 %v796_v16, %v228_v22 }
  0xb3   :  { %v201_v26 = vadd.f32 %v796_v16, %v200_v23  ;;  %v211_v27 = vadd.f32 %v796_v16, %v210_v24 }
  0xb4   :  { %246 = vst [vmem:[#allocation7 + $0x40] sm:$0xff] %v801_v25  ;;  %v386_v7 = vmul.f32 %v801_v25, %v801_v25 }
  0xb5   :  { %239 = vst [vmem:[#allocation7 + $0x8] sm:$0xff] %v201_v26  ;;  %v379_v37 = vmul.f32 %v201_v26, %v201_v26  ;;  %v354_v39 = vadd.f32 %v201_v26, %v199_v19  ;;  %v383_v58 = vmul.f32 %v211_v27, %v211_v27  ;;  %v390_v19 = vmul.f32 %v806_v28, %v806_v28 }
  0xb6   :  { %243 = vst [vmem:[#allocation7 + $0x28] sm:$0xff] %v211_v27 }
  0xb7   :  { %250 = vst [vmem:[#allocation7 + $0x60] sm:$0xff] %v806_v28  ;;  %v394_v43 = vadd.f32 %v379_v37, %v378_v38 }
  0xb9   :  { %v220_v29 = vpop.f32.mrf.mxu2  ;;  %v230_v30 = vpop.f32.mrf.mxu3 }
  0xba   :  { %v203_v31 = vpop.f32.mrf.mxu0  ;;  %v213_v32 = vpop.f32.mrf.mxu1  ;;  %v811_v33 = vadd.f32 %v796_v16, %v220_v29  ;;  %v816_v36 = vadd.f32 %v796_v16, %v230_v30 }
  0xbb   :  { %v204_v34 = vadd.f32 %v796_v16, %v203_v31  ;;  %v214_v35 = vadd.f32 %v796_v16, %v213_v32 }
  0xbc   :  { %247 = vst [vmem:[#allocation7 + $0x48] sm:$0xff] %v811_v33  ;;  %v387_v10 = vmul.f32 %v811_v33, %v811_v33  ;;  %v391_v22 = vmul.f32 %v816_v36, %v816_v36 }
  0xbd   :  { %240 = vst [vmem:[#allocation7 + $0x10] sm:$0xff] %v204_v34  ;;  %v380_v40 = vmul.f32 %v204_v34, %v204_v34  ;;  %v355_v47 = vadd.f32 %v354_v39, %v204_v34  ;;  %v384_v1 = vmul.f32 %v214_v35, %v214_v35 }
  0xbe   :  { %244 = vst [vmem:[#allocation7 + $0x30] sm:$0xff] %v214_v35 }
  0xbf   :  { %251 = vst [vmem:[#allocation7 + $0x68] sm:$0xff] %v816_v36  ;;  %v395_v51 = vadd.f32 %v394_v43, %v380_v40 }
  0xc1   :  { %v223_v41 = vpop.f32.mrf.mxu2  ;;  %v233_v42 = vpop.f32.mrf.mxu3 }
  0xc2   :  { %v205_v44 = vpop.f32.mrf.mxu0  ;;  %v215_v45 = vpop.f32.mrf.mxu1  ;;  %v224_v46 = vadd.f32 %v796_v16, %v223_v41  ;;  %v234_v50 = vadd.f32 %v796_v16, %v233_v42 }
  0xc3   :  { %v206_v48 = vadd.f32 %v796_v16, %v205_v44  ;;  %v216_v49 = vadd.f32 %v796_v16, %v215_v45  ;;  %v353_v45 = vld [vmem:[#allocation8] sm:$0x1] }
  0xc4   :  { %248 = vst [vmem:[#allocation7 + $0x50] sm:$0xff] %v224_v46  ;;  %v388_v14 = vmul.f32 %v224_v46, %v224_v46 }
  0xc5   :  { %241 = vst [vmem:[#allocation7 + $0x18] sm:$0xff] %v206_v48  ;;  %v356_v52 = vadd.f32 %v355_v47, %v206_v48  ;;  %v381_v53 = vmul.f32 %v206_v48, %v206_v48  ;;  %v385_v5 = vmul.f32 %v216_v49, %v216_v49 }
  0xc6   :  { %245 = vst [vmem:[#allocation7 + $0x38] sm:$0xff] %v216_v49 }
  0xc7   :  { %v357_v55 = vadd.f32 %v356_v52, %v209_v20  ;;  %v396_v56 = vadd.f32 %v395_v51, %v381_v53  ;;  %252 = vst [vmem:[#allocation7 + $0x70] sm:$0xff] %v234_v50 }
  0xc9   :  { %v397_v59 = vadd.f32 %v396_v56, %v382_v54  ;;  %v358_v60 = vadd.f32 %v357_v55, %v211_v27  ;;  %v225_v61 = vpop.f32.mrf.mxu2  ;;  %v235_v62 = vpop.f32.mrf.mxu3  ;;  %v392_v27 = vmul.f32 %v234_v50, %v234_v50 }
  0xca   :  { %v226_v63 = vadd.f32 %v796_v16, %v225_v61  ;;  %v236_v0 = vadd.f32 %v796_v16, %v235_v62 }
  0xcb   :  { %v359_v2 = vadd.f32 %v358_v60, %v214_v35  ;;  %v398_v3 = vadd.f32 %v397_v59, %v383_v58 }
  0xcc   :  { %249 = vst [vmem:[#allocation7 + $0x58] sm:$0xff] %v226_v63  ;;  %v389_v18 = vmul.f32 %v226_v63, %v226_v63  ;;  %v393_v32 = vmul.f32 %v236_v0, %v236_v0 }
  0xcd   :  { %v360_v4 = vadd.f32 %v359_v2, %v216_v49  ;;  %v399_v6 = vadd.f32 %v398_v3, %v384_v1  ;;  %253 = vst [vmem:[#allocation7 + $0x78] sm:$0xff] %v236_v0  ;;  %v377_v49 = vld [vmem:[#allocation10] sm:$0x1] }
  0xce   :  { %459 = dma.vmem_to_hbm [thread:$0]  %s452_s30, 2048, %s454_s8, [#allocation4], %s752_s3, %s752_s3, %s753_s9  }
  0xcf   :  { %v361_v8 = vadd.f32 %v360_v4, %v801_v25  ;;  %v400_v9 = vadd.f32 %v399_v6, %v385_v5  ;;  %v754_v25 = vmov 128.0  }
  0xd0   :  { %614 = vrcp.f32 %v754_v25 }
  0xd1   :  { %v401_v11 = vadd.f32 %v400_v9, %v386_v7  ;;  %v362_v12 = vadd.f32 %v361_v8, %v811_v33 }
  0xd3   :  { %v363_v13 = vadd.f32 %v362_v12, %v224_v46  ;;  %v402_v15 = vadd.f32 %v401_v11, %v387_v10 }
  0xd5   :  { %v403_v16 = vadd.f32 %v402_v15, %v388_v14  ;;  %v364_v17 = vadd.f32 %v363_v13, %v226_v63 }
  0xd6   :  { %v615_v33 = vpop.eup %614 }
  0xd7   :  { %v365_v20 = vadd.f32 %v364_v17, %v806_v28  ;;  %v404_v21 = vadd.f32 %v403_v16, %v389_v18  ;;  %v422_v38 = vmul.f32 128.0, %v615_v33  ;;  %vm426_vm0 = vweird.f32 %v615_v33 }
  0xd9   :  { %v405_v23 = vadd.f32 %v404_v21, %v390_v19  ;;  %v366_v24 = vadd.f32 %v365_v20, %v816_v36  ;;  %v423_v43 = vsub.f32 1.0, %v422_v38 }
  0xdb   :  { %v367_v26 = vadd.f32 %v366_v24, %v234_v50  ;;  %v406_v29 = vadd.f32 %v405_v23, %v391_v22  ;;  %v424_v48 = vmul.f32 %v615_v33, %v423_v43 }
  0xdd   :  { %v407_v30 = vadd.f32 %v406_v29, %v392_v27  ;;  %v368_v31 = vadd.f32 %v367_v26, %v236_v0  ;;  %v425_v53 = vadd.f32 %v615_v33, %v424_v48 }
  0xdf   :  { %v369_v34 = vrot.slane %v368_v31, 4  ;;  %v408_v35 = vadd.f32 %v407_v30, %v393_v32  ;;  %v427_v54 = vsel %vm426_vm0, %v615_v33, %v425_v53 }
  0xe1   :  { %v370_v37 = vadd.f32 %v369_v34, %v368_v31  ;;  %v409_v28 = vrot.slane %v408_v35, 4 }
  0xe3   :  { %v371_v39 = vrot.slane %v370_v37, 2  ;;  %v410_v40 = vadd.f32 %v409_v28, %v408_v35 }
  0xe5   :  { %v372_v41 = vadd.f32 %v371_v39, %v370_v37  ;;  %v411_v42 = vrot.slane %v410_v40, 2 }
  0xe7   :  { %v373_v36 = vrot.slane %v372_v41, 1  ;;  %v412_v44 = vadd.f32 %v411_v42, %v410_v40 }
  0xe9   :  { %v374_v46 = vadd.f32 %v373_v36, %v372_v41  ;;  %v413_v47 = vrot.slane %v412_v44, 1 }
  0xeb   :  { %v414_v50 = vadd.f32 %v413_v47, %v412_v44  ;;  %v375_v51 = vadd.f32 %v374_v46, %v353_v45 }
  0xed   :  { %376 = vst [vmem:[#allocation8] sm:$0x1] %v375_v51  ;;  %v415_v52 = vadd.f32 %v414_v50, %v377_v49 }
  0xef   :  { %416 = vst [vmem:[#allocation10] sm:$0x1] %v415_v52 }
  0xf4   :  { %v420_v55 = vld [vmem:[#allocation8] sm:$0x1] }
  0xf5   :  { %v428_v56 = vmul.f32 %v427_v54, %v420_v55 }
  0xf6   :  { %v429_v57 = vld [vmem:[#allocation10] sm:$0x1] }
  0xf7   :  { %v431_v58 = vmul.f32 %v428_v56, %v428_v56  ;;  %434 = vst [vmem:[#allocation8] sm:$0x1] %v428_v56  ;;  %v430_v59 = vmul.f32 %v429_v57, %v427_v54 }
  0xf8   :  { %470 = dma.vmem_to_hbm [thread:$0]  %s466_s11, 16, %s468_s14, [#allocation9]  }
  0xf9   :  { %v432_v60 = vsub.f32 %v430_v59, %v431_v58 }
  0xfb   :  { %v433_v61 = vmax.f32 %v432_v60, 0.0 }
  0xfd   :  { %v435_v62 = vadd.f32 1e-05, %v433_v61 }
  0xff   :  { %616 = vrsqrt.f32 %v435_v62  ;;  %vm442_vm2 = vweird.f32 %v435_v62 }
 0x105   :  { %v617_v63 = vpop.eup %616 }
 0x106   :  { %v437_v0 = vmul.f32 %v617_v63, %v435_v62  ;;  %vm443_vm1 = vweird.f32 %v617_v63 }
 0x107   :  { %vm444_vm3 = vmor %vm442_vm2, %vm443_vm1 }
 0x108   :  { %v438_v1 = vmul.f32 %v617_v63, %v437_v0 }
 0x10a   :  { %v439_v2 = vmul.f32 0.5, %v438_v1 }
 0x10c   :  { %v440_v3 = vsub.f32 1.5, %v439_v2 }
 0x10e   :  { %v441_v4 = vmul.f32 %v617_v63, %v440_v3 }
 0x110   :  { %v445_v5 = vsel %vm444_vm3, %v617_v63, %v441_v4 }
 0x111   :  { %446 = vst [vmem:[#allocation10] sm:$0x1] %v445_v5 }
 0x112   :  { %481 = dma.vmem_to_hbm [thread:$0]  %s477_s15, 16, %s479_s18, [#allocation9]  }
 0x113   :  { %742 = dma.done.wait [#allocation4], 2048  }
 0x114   :  { %743 = vsyncadd [#allocation4], 4294965248 }
 0x115   :  { %744 = dma.done.wait [#allocation9], 32  }
 0x116   :  { %745 = vsyncadd [#allocation9], 4294967264 }
 0x117   :  { %494 = vsyncpa [#allocation3], 1 }
 0x118   :  { %495 = vsyncpa [#allocation6], 1 }
 0x119   :  { %496 = vsyncpa [#allocation4], 1 }
 0x11a   :  { %497 = vsyncpa [#allocation9], 1 }

</bundles_post_ra>
